<compile_context>
chip_gen: v5e
topology: v5e:2x2
jax: 0.10.0
libtpu: 0.0.40
codegen_flags: <defaults>
</compile_context>

<pallas_src>
import math

import jax
import jax.numpy as jnp
from jax import lax
from jax.experimental import pallas as pl
from jax.experimental.pallas import tpu as pltpu


# ----------------------------- tiling helper --------------------------------


def _tile(dim, target, align):
    """Largest block size <= target that divides `dim` and is either the full
    dim or a multiple of `align` (respects the TPU (8,128) block constraint)."""
    if dim <= target:
        return dim
    t = (target // align) * align
    while t >= align:
        if dim % t == 0:
            return t
        t -= align
    return dim  # fall back to the full (untiled) dimension


# ------------------------ per-head input projection --------------------------
# x:(B,S,Din) @ W_h:(H,Din,depth) + b_h:(H,1,depth) -> (B,H,S,depth)
# grid = (B, H, S//tm, Din//tk); reduction over the Din (k) axis.


def proj_heads_kernel(x_ref, w_ref, b_ref, o_ref, acc_ref):
    k_id = pl.program_id(3)

    @pl.when(k_id == 0)
    def _():
        acc_ref[...] = jnp.zeros_like(acc_ref)

    acc_ref[...] += jnp.dot(
        x_ref[0], w_ref[0], preferred_element_type=jnp.float32
    )

    @pl.when(k_id == pl.num_programs(3) - 1)
    def _():
        o_ref[0, 0] = (acc_ref[...] + b_ref[0]).astype(o_ref.dtype)


def project_to_heads(x, w_h, b_h, *, tm_target=256, tk_target=512):
    B, S, d_in = x.shape
    H, _, depth = w_h.shape
    tm = _tile(S, tm_target, 8)
    tk = _tile(d_in, tk_target, 128)
    grid = (B, H, S // tm, d_in // tk)
    return pl.pallas_call(
        proj_heads_kernel,
        grid=grid,
        in_specs=[
            pl.BlockSpec((1, tm, tk), lambda b, h, si, ki: (b, si, ki)),
            pl.BlockSpec((1, tk, depth), lambda b, h, si, ki: (h, ki, 0)),
            pl.BlockSpec((1, 1, depth), lambda b, h, si, ki: (h, 0, 0)),
        ],
        out_specs=pl.BlockSpec(
            (1, 1, tm, depth), lambda b, h, si, ki: (b, h, si, 0)
        ),
        out_shape=jax.ShapeDtypeStruct((B, H, S, depth), jnp.float32),
        scratch_shapes=[pltpu.VMEM((tm, depth), jnp.float32)],
        compiler_params=pltpu.CompilerParams(
            dimension_semantics=("parallel", "parallel", "parallel", "arbitrary")
        ),
    )(x, w_h, b_h)


# ------------------------------- attention -----------------------------------
# q:(B,H,Sq,depth), k/v:(B,H,Sk,depth), mask:(B,1 or H,Sq,Sk)
# grid = (B, H, Sq//tq); K/V resident per (b,h); full softmax per query tile.


def attention_kernel(q_ref, k_ref, v_ref, m_ref, attn_ref, o_ref):
    q = q_ref[0, 0]          # (tq, depth)
    k = k_ref[0, 0]          # (Sk, depth)
    v = v_ref[0, 0]          # (Sk, depth)
    m = m_ref[0, 0]          # (tq, Sk)

    depth = q.shape[-1]
    scale = 1.0 / math.sqrt(float(depth))

    # QK^T without materializing k.T (contract the last dims directly).
    logits = lax.dot_general(
        q, k, (((1,), (1,)), ((), ())), preferred_element_type=jnp.float32
    ) * scale
    # mask == 1 -> blocked (additive -1e9 in the reference); single select.
    logits = jnp.where(m != 0, logits - 1e9, logits)

    # numerically-stable softmax along the key axis
    logits = logits - jnp.max(logits, axis=-1, keepdims=True)
    p = jnp.exp(logits)
    attn = p * pl.reciprocal(jnp.sum(p, axis=-1, keepdims=True), approx=True)

    attn_ref[0, 0] = attn
    o_ref[0, 0] = jnp.dot(attn, v, preferred_element_type=jnp.float32)


def scaled_dot_product_attention(q, k, v, mask, *, tq_target=128):
    B, H, Sq, depth = q.shape
    Sk = k.shape[2]
    if mask is None:
        mask = jnp.zeros((B, 1, Sq, Sk), jnp.float32)
    mH = mask.shape[1]
    tq = _tile(Sq, tq_target, 8)
    grid = (B, H, Sq // tq)

    attn, out = pl.pallas_call(
        attention_kernel,
        grid=grid,
        in_specs=[
            pl.BlockSpec((1, 1, tq, depth), lambda b, h, qi: (b, h, qi, 0)),
            pl.BlockSpec((1, 1, Sk, depth), lambda b, h, qi: (b, h, 0, 0)),
            pl.BlockSpec((1, 1, Sk, depth), lambda b, h, qi: (b, h, 0, 0)),
            pl.BlockSpec(
                (1, 1, tq, Sk),
                lambda b, h, qi: (b, h if mH > 1 else 0, qi, 0),
            ),
        ],
        out_specs=[
            pl.BlockSpec((1, 1, tq, Sk), lambda b, h, qi: (b, h, qi, 0)),
            pl.BlockSpec((1, 1, tq, depth), lambda b, h, qi: (b, h, qi, 0)),
        ],
        out_shape=(
            jax.ShapeDtypeStruct((B, H, Sq, Sk), jnp.float32),
            jax.ShapeDtypeStruct((B, H, Sq, depth), jnp.float32),
        ),
        compiler_params=pltpu.CompilerParams(
            dimension_semantics=("parallel", "parallel", "parallel")
        ),
    )(q, k, v, mask)
    return out, attn


# ----------------------- output (dense) projection ---------------------------
# x:(B,H,S,depth) @ W_h:(H,depth,Dout) summed over heads + b:(1,Dout)
# -> (B,S,Dout).  Heads are the (innermost) reduction axis: no merge transpose.


def dense_merge_kernel(x_ref, w_ref, b_ref, o_ref, acc_ref):
    h = pl.program_id(3)

    @pl.when(h == 0)
    def _():
        acc_ref[...] = jnp.zeros_like(acc_ref)

    acc_ref[...] += jnp.dot(
        x_ref[0, 0], w_ref[0], preferred_element_type=jnp.float32
    )

    @pl.when(h == pl.num_programs(3) - 1)
    def _():
        o_ref[0] = (acc_ref[...] + b_ref[...]).astype(o_ref.dtype)


def dense_merge(x_h, w_h, b2d, *, tm_target=256, tn_target=256):
    B, H, S, depth = x_h.shape
    d_out = w_h.shape[2]
    tm = _tile(S, tm_target, 8)
    tn = _tile(d_out, tn_target, 128)
    grid = (B, S // tm, d_out // tn, H)
    return pl.pallas_call(
        dense_merge_kernel,
        grid=grid,
        in_specs=[
            pl.BlockSpec((1, 1, tm, depth), lambda b, si, ni, h: (b, h, si, 0)),
            pl.BlockSpec((1, depth, tn), lambda b, si, ni, h: (h, 0, ni)),
            pl.BlockSpec((1, tn), lambda b, si, ni, h: (0, ni)),
        ],
        out_specs=pl.BlockSpec((1, tm, tn), lambda b, si, ni, h: (b, si, ni)),
        out_shape=jax.ShapeDtypeStruct((B, S, d_out), jnp.float32),
        scratch_shapes=[pltpu.VMEM((tm, tn), jnp.float32)],
        compiler_params=pltpu.CompilerParams(
            dimension_semantics=("parallel", "parallel", "parallel", "arbitrary")
        ),
    )(x_h, w_h, b2d)


# --------------------------- Module-level wrapper ----------------------------


class MultiHeadAttentionPallas:
    def __init__(self, d_model, num_heads, key):
        assert d_model % num_heads == 0
        self.d_model = d_model
        self.num_heads = num_heads
        self.depth = d_model // num_heads

        keys = jax.random.split(key, 8)
        lim = 1.0 / math.sqrt(d_model)

        def init_linear(kw, kb):
            # PyTorch nn.Linear layout: W is (out_features, in_features).
            w = jax.random.uniform(kw, (d_model, d_model), jnp.float32, -lim, lim)
            b = jax.random.uniform(kb, (d_model,), jnp.float32, -lim, lim)
            return w, b

        self.wq, self.bq = init_linear(keys[0], keys[1])
        self.wk, self.bk = init_linear(keys[2], keys[3])
        self.wv, self.bv = init_linear(keys[4], keys[5])
        self.wd, self.bd = init_linear(keys[6], keys[7])

        H, depth = num_heads, self.depth

        # Pre-arranged kernel layouts (computed once; no per-call transposes).
        def to_heads(w):  # (out,in) -> (H, in, depth): y_head_h = x @ w_h
            return jnp.transpose(w.T.reshape(d_model, H, depth), (1, 0, 2))

        self.wq_h = to_heads(self.wq)
        self.wk_h = to_heads(self.wk)
        self.wv_h = to_heads(self.wv)
        self.bq_h = self.bq.reshape(H, 1, depth)
        self.bk_h = self.bk.reshape(H, 1, depth)
        self.bv_h = self.bv.reshape(H, 1, depth)
        # dense: input features are concat(heads) -> rows grouped by head.
        self.wd_h = self.wd.T.reshape(H, depth, d_model)
        self.bd_2d = self.bd.reshape(1, d_model)

    def __call__(self, v, k, q, mask):
        # q:(B,Sq,d_model), k/v:(B,Skv,d_model), mask broadcastable (B,1,Sq,Skv)
        qh = project_to_heads(q, self.wq_h, self.bq_h)   # (B,H,Sq,depth)
        kh = project_to_heads(k, self.wk_h, self.bk_h)   # (B,H,Skv,depth)
        vh = project_to_heads(v, self.wv_h, self.bv_h)   # (B,H,Skv,depth)

        out_h, attn = scaled_dot_product_attention(qh, kh, vh, mask)

        out = dense_merge(out_h, self.wd_h, self.bd_2d)  # (B,Sq,d_model)
        return out, attn


# ------------------------------ Pure-JAX ref ---------------------------------


def reference_mha(mha, v, k, q, mask):
    B, Sq, d = q.shape

    def lin(x, w, b):
        return x @ w.T + b

    q_p = lin(q, mha.wq, mha.bq)
    k_p = lin(k, mha.wk, mha.bk)
    v_p = lin(v, mha.wv, mha.bv)

    def split(x):
        return jnp.transpose(
            x.reshape(B, -1, mha.num_heads, mha.depth), (0, 2, 1, 3)
        )

    qh, kh, vh = split(q_p), split(k_p), split(v_p)
    logits = jnp.einsum("bhqd,bhkd->bhqk", qh, kh) / jnp.sqrt(
        jnp.float32(mha.depth)
    )
    logits = logits + mask * (-1e9)
    attn = jax.nn.softmax(logits, axis=-1)
    out = jnp.einsum("bhqk,bhkd->bhqd", attn, vh)
    out = jnp.transpose(out, (0, 2, 1, 3)).reshape(B, Sq, d)
    return lin(out, mha.wd, mha.bd), attn


# ---------------------------------- main -------------------------------------

if __name__ == "__main__":
    d_model, num_heads = 32, 4
    B, S = 2, 8

    key = jax.random.PRNGKey(0)
    k_params, k_q, k_k, k_v = jax.random.split(key, 4)

    mha = MultiHeadAttentionPallas(d_model, num_heads, k_params)

    q = jax.random.normal(k_q, (B, S, d_model), jnp.float32)
    k = jax.random.normal(k_k, (B, S, d_model), jnp.float32)
    v = jax.random.normal(k_v, (B, S, d_model), jnp.float32)
    # causal mask: 1.0 where attention is blocked, broadcast over heads
    mask = jnp.triu(jnp.ones((S, S), jnp.float32), k=1)[None, None, :, :]
    mask = jnp.broadcast_to(mask, (B, 1, S, S))

    out, attn = mha(v, k, q, mask)
    out = jax.block_until_ready(out)
    attn = jax.block_until_ready(attn)

    ref_out, ref_attn = reference_mha(mha, v, k, q, mask)
    assert out.shape == (B, S, d_model)
    assert attn.shape == (B, num_heads, S, S)
    # Tolerances account for the approximate-reciprocal softmax denominator.
    assert jnp.allclose(out, ref_out, atol=2e-3, rtol=2e-3)
    assert jnp.allclose(attn, ref_attn, atol=2e-3, rtol=2e-3)

    print("KERNEL_OK")
</pallas_src>

<mosaic_0001>
module attributes {stable_mosaic.version = 11 : i64} {
  func.func @proj_heads_kernel(%arg0: i32, %arg1: i32, %arg2: i32, %arg3: i32, %arg4: memref<1x8x32xf32, #tpu.memory_space<vmem>>, %arg5: memref<1x32x8xf32, #tpu.memory_space<vmem>>, %arg6: memref<1x1x8xf32, #tpu.memory_space<vmem>>, %arg7: memref<1x1x8x8xf32, #tpu.memory_space<vmem>>, %arg8: memref<8x8xf32, #tpu.memory_space<vmem>>) attributes {dimension_semantics = [#tpu.dimension_semantics<parallel>, #tpu.dimension_semantics<parallel>, #tpu.dimension_semantics<parallel>, #tpu.dimension_semantics<arbitrary>], iteration_bounds = array<i64: 2, 4, 1, 1>, scalar_prefetch = 0 : i64, scratch_operands = 1 : i64, tpu.core_type = #tpu.core_type<tc>, window_params = [{transform_indices = @transform_0, window_bounds = array<i64: 1, 8, 32>}, {transform_indices = @transform_1, window_bounds = array<i64: 1, 32, 8>}, {transform_indices = @transform_2, window_bounds = array<i64: 1, 1, 8>}, {transform_indices = @transform_3, window_bounds = array<i64: 1, 1, 8, 8>}]} {
    %c0_i32 = arith.constant 0 : i32
    %0 = arith.cmpi eq, %arg3, %c0_i32 : i32
    %1 = arith.extui %0 : i1 to i32
    %c0_i32_0 = arith.constant 0 : i32
    %2 = arith.cmpi ne, %1, %c0_i32_0 : i32
    scf.if %2 {
      %cst_12 = arith.constant 0.000000e+00 : f32
      %14 = vector.broadcast %cst_12 : f32 to vector<8x8xf32>
      %c0_13 = arith.constant 0 : index
      %c0_14 = arith.constant 0 : index
      %15 = vector.load %arg8[%c0_13, %c0_14] : memref<8x8xf32, #tpu.memory_space<vmem>>, vector<8x8xf32>
      tpu.vector_store %arg8[%c0_13, %c0_14], %14 {strides = array<i32>} : memref<8x8xf32, #tpu.memory_space<vmem>>, vector<8x8xf32>,
    } else {
    }
    %c0 = arith.constant 0 : index
    %c0_1 = arith.constant 0 : index
    %3 = vector.load %arg8[%c0, %c0_1] : memref<8x8xf32, #tpu.memory_space<vmem>>, vector<8x8xf32>
    %c0_2 = arith.constant 0 : index
    %c0_3 = arith.constant 0 : index
    %c0_4 = arith.constant 0 : index
    %4 = vector.load %arg4[%c0_2, %c0_3, %c0_4] : memref<1x8x32xf32, #tpu.memory_space<vmem>>, vector<1x8x32xf32>
    %5 = vector.shape_cast %4 : vector<1x8x32xf32> to vector<8x32xf32>
    %c0_5 = arith.constant 0 : index
    %c0_6 = arith.constant 0 : index
    %c0_7 = arith.constant 0 : index
    %6 = vector.load %arg5[%c0_5, %c0_6, %c0_7] : memref<1x32x8xf32, #tpu.memory_space<vmem>>, vector<1x32x8xf32>
    %7 = vector.shape_cast %6 : vector<1x32x8xf32> to vector<32x8xf32>
    %cst = arith.constant dense<0.000000e+00> : vector<8x8xf32>
    %8 = tpu.matmul %5, %7, %cst {dimension_numbers = #tpu.dot_dimension_numbers<[1], [0], [0], [1], [0, 0, 1, 1], [], []>} : vector<8x32xf32>, vector<32x8xf32>, vector<8x8xf32> -> vector<8x8xf32>
    %9 = arith.addf %3, %8 : vector<8x8xf32>
    %c0_8 = arith.constant 0 : index
    %c0_9 = arith.constant 0 : index
    %10 = vector.load %arg8[%c0_8, %c0_9] : memref<8x8xf32, #tpu.memory_space<vmem>>, vector<8x8xf32>
    tpu.vector_store %arg8[%c0_8, %c0_9], %9 {strides = array<i32>} : memref<8x8xf32, #tpu.memory_space<vmem>>, vector<8x8xf32>,
    %c0_i32_10 = arith.constant 0 : i32
    %11 = arith.cmpi eq, %arg3, %c0_i32_10 : i32
    %12 = arith.extui %11 : i1 to i32
    %c0_i32_11 = arith.constant 0 : i32
    %13 = arith.cmpi ne, %12, %c0_i32_11 : i32
    scf.if %13 {
      %c0_12 = arith.constant 0 : index
      %c0_13 = arith.constant 0 : index
      %14 = vector.load %arg8[%c0_12, %c0_13] : memref<8x8xf32, #tpu.memory_space<vmem>>, vector<8x8xf32>
      %c0_14 = arith.constant 0 : index
      %c0_15 = arith.constant 0 : index
      %c0_16 = arith.constant 0 : index
      %15 = vector.load %arg6[%c0_14, %c0_15, %c0_16] : memref<1x1x8xf32, #tpu.memory_space<vmem>>, vector<1x1x8xf32>
      %16 = vector.shape_cast %15 : vector<1x1x8xf32> to vector<1x8xf32>
      %17 = vector.broadcast %16 : vector<1x8xf32> to vector<8x8xf32>
      %18 = arith.addf %14, %17 : vector<8x8xf32>
      %c0_17 = arith.constant 0 : index
      %c0_18 = arith.constant 0 : index
      %c0_19 = arith.constant 0 : index
      %c0_20 = arith.constant 0 : index
      %19 = vector.load %arg7[%c0_17, %c0_18, %c0_19, %c0_20] : memref<1x1x8x8xf32, #tpu.memory_space<vmem>>, vector<1x1x8x8xf32>
      %20 = vector.shape_cast %19 : vector<1x1x8x8xf32> to vector<8x8xf32>
      %21 = vector.shape_cast %18 : vector<8x8xf32> to vector<1x1x8x8xf32>
      tpu.vector_store %arg7[%c0_17, %c0_18, %c0_19, %c0_20], %21 {strides = array<i32>} : memref<1x1x8x8xf32, #tpu.memory_space<vmem>>, vector<1x1x8x8xf32>,
    } else {
    }
    return
  }
  func.func @transform_0(%arg0: i32, %arg1: i32, %arg2: i32, %arg3: i32) -> (i32, i32, i32) {
    %c0_i32 = arith.constant 0 : i32
    return %arg0, %arg2, %arg3 : i32, i32, i32
  }
  func.func @transform_1(%arg0: i32, %arg1: i32, %arg2: i32, %arg3: i32) -> (i32, i32, i32) {
    %c0_i32 = arith.constant 0 : i32
    %c0_i32_0 = arith.constant 0 : i32
    return %arg1, %arg3, %c0_i32 : i32, i32, i32
  }
  func.func @transform_2(%arg0: i32, %arg1: i32, %arg2: i32, %arg3: i32) -> (i32, i32, i32) {
    %c0_i32 = arith.constant 0 : i32
    %c0_i32_0 = arith.constant 0 : i32
    %c0_i32_1 = arith.constant 0 : i32
    return %arg1, %c0_i32, %c0_i32_0 : i32, i32, i32
  }
  func.func @transform_3(%arg0: i32, %arg1: i32, %arg2: i32, %arg3: i32) -> (i32, i32, i32, i32) {
    %c0_i32 = arith.constant 0 : i32
    %c0_i32_0 = arith.constant 0 : i32
    return %arg0, %arg1, %arg2, %c0_i32 : i32, i32, i32, i32
  }
}

</mosaic_0001>

<bundles_post_ra>
// kernel: tpu_custom_call.1
= control target key start
LH: loop header
LB: loop body
LE: loop exit
PB: predicated region body
PF: predicated region fallthrough
CT: control target
= control target key end

     0   :  { %8 = vsyncpa [#allocation4], 0  ;;  %s785_s0 = inlined_call_operand.vmem [shape: f32[2,8,32], index: 0, kind: input, shape index: {}]   ;;  %s786_s1 = inlined_call_operand.vmem [shape: f32[4,32,8], index: 1, kind: input, shape index: {}]   ;;  %s787_s2 = inlined_call_operand.vmem [shape: f32[4,1,8], index: 2, kind: input, shape index: {}]   ;;  %s788_s3 = inlined_call_operand.hbm [shape: f32[2,4,8,8], index: 3, kind: output, shape index: {}]  }
   0x1   :  { %10 = vsyncpa [#allocation4 + $0x1], 0  ;;  %s654_s12 = smov 0   ;;  %s656_s13 = smov 0  }
   0x2   :  { %s658_s14 = smov 0   ;;  %s660_s15 = smov 0  }
   0x3   :  { %s662_s16 = smov 0   ;;  %s664_s17 = smov 0  }
   0x4   :  { %s666_s18 = smov 0   ;;  %s668_s19 = smov 0  }
   0x5 LB: > { %s448_s20 = sadd.s32 4294967295, %s631_s19   ;;  %s449_s21 = sadd.s32 4294967294, %s631_s19   ;;  %s631_s19 = sphi %s668_s19, %s16_s19   ;;  %s627_s18 = sphi %s666_s18, %s797_s18   ;;  %s623_s17 = sphi %s664_s17, %s796_s17   ;;  %s619_s16 = sphi %s662_s16, %s795_s16   ;;  %s615_s15 = sphi %s660_s15, %s794_s15   ;;  %s611_s14 = sphi %s658_s14, %s793_s14   ;;  %s607_s13 = sphi %s656_s13, %s792_s13   ;;  %s603_s12 = sphi %s654_s12, %s791_s12  }
   0x6   : > { %s38_s22 = sadd.s32 1, %s623_s17  ;;  %s42_s23 = sadd.s32 1, %s627_s18 }
   0x7   : > { %p40_p0 = scmp.ge.s32.totalorder %s38_s22, 4  ;;  %p147_p1 = scmp.ne.s32.totalorder %s611_s14, %s607_s13 }
   0x8   : > { %p148_p2 = scmp.eq.s32.totalorder %s448_s20, 7  ;;  %p153_p5 = scmp.ne.s32.totalorder %s607_s13, %s603_s12 }
   0x9   : > { %s799_s22 = smov (%p40_p0, %s38_s22), 0  ;;  %s801_s23 = smov (!%p40_p0, %s42_s23), %s627_s18 }
   0xa   : > { %s131_s24 = ssub.s32 %s623_s17, %s799_s22  ;;  %p705_p3 = por %p148_p2, %p147_p1 }
   0xb   : > { %p44_p4 = scmp.ge.s32.totalorder %s801_s23, 2  ;;  %p154_p6 = scmp.eq.s32.totalorder %s449_s21, 7 }
   0xc   : > { %p452_p7 = scmp.ge.s32.totalorder %s631_s19, 1  ;;  %p204_p9 = scmp.lt.s32.totalorder %s631_s19, 9 }
   0xd   : > { %s803_s23 = smov (%p44_p4, %s801_s23), 0  ;;  %p714_p8 = por %p154_p6, %p153_p5 }
   0xe   : > { %s130_s27 = ssub.s32 %s627_s18, %s803_s23  ;;  %s137_s28 = sadd.s32 1, %s611_s14 }
   0xf   : > { %s132_s29 = sor.u32 %s131_s24, %s130_s27  ;;  %p205_p10 = pnand %p452_p7, %p204_p9 }
  0x10   : > { %p135_p11 = scmp.eq.s32.totalorder %s132_s29, 0  ;;  %p256_p12 = scmp.lt.s32.totalorder (!%p205_p10), %s615_s15, 3 }
  0x11   : > { %208 = sbr.rel (%p205_p10) target bundleno = 175 (0xaf), region = 32  ;;  %p245_p13 = scmp.lt.s32.totalorder (!%p205_p10), %s619_s16, 1 }
  0x12   : > { %s723_s30 = scalar_select %p135_p11, %s611_s14, %s137_s28  }
  0x13   : > { %s459_s29 = sshll.u32 (!%p205_p10), %s619_s16, 2 }
  0x16   : > { %vm272_vm0 = vcmask 64512   ;;  %v633_v0 = vmov 0.0   ;;  %s257_s4 = scalar_select %p256_p12, %s615_s15, 3  ;;  %vm280_vm1 = vcmask 261120  }
  0x17   : > { %273 = vst.msk [vmem:[#allocation2] sm:$0xff] %vm272_vm0, %v633_v0  ;;  %s246_s5 = scalar_select %p245_p13, %s619_s16, 1 }
  0x18   : > { %s463_s6 = sshll.u32 %s257_s4, 5  ;;  %s267_s9 = scalar_lea.vmem %s787_s2, %s257_s4 }
  0x19   : > { %s263_s20 = scalar_lea.vmem %s786_s1, %s463_s6  ;;  %s454_s21 = sshll.u32 %s246_s5, 3  ;;  %v536_v9 = vld [vmem:[%s267_s9] ss:$0 sm:$0xff] }
  0x1a   : > { %v279_v1 = vld [vmem:[%s263_s20 + $0x18] sm:$0xff]  ;;  %v278_v2 = vld [vmem:[%s263_s20 + $0x10] sm:$0xff]  ;;  %v277_v3 = vld [vmem:[%s263_s20 + $0x8] sm:$0xff]  ;;  %s254_s28 = scalar_lea.vmem %s785_s0, %s454_s21  ;;  %s242_s4 = sand.u32 1, %s607_s13  }
  0x1b   : > { %296 = vmatpush.msra.mxu0 %v279_v1  ;;  %v276_v4 = vld [vmem:[%s263_s20] sm:$0xff]  ;;  %s329_s5 = sadd.s32 %s615_s15, %s459_s29  ;;  %s453_s6 = sshll.u32 %s242_s4, 3 }
  0x1c   : > { %v275_v5 = vld [vmem:[%s254_s28] sm:$0xff]  ;;  %s460_s7 = sshll.u32 %s329_s5, 3  ;;  %s244_s20 = scalar_lea.vmem [#allocation3], %s453_s6 }
  0x1d   : > { %297 = vmatpush.msra.mxu0 %v278_v2  ;;  %s331_s11 = scalar_lea.hbm %s788_s3, %s460_s7  ;;  %s333_s21 = sshll.u32 %s244_s20, 4  ;;  %s334_s21 = int_to_ptr.vmem [resolvable:$true] %s333_s21 }
  0x1e   : > { %v274_v6 = vld [vmem:[#allocation2] sm:$0xff]  ;;  %s335_s24 = sshll.u32 %s331_s11, 4  ;;  %s318_s15 = scalar_lea.sflag [#allocation4], %s242_s4  ;;  %s336_s24 = int_to_ptr.hbm [resolvable:$true] %s335_s24 }
  0x1f   : > { %298 = vmatpush.msra.mxu0 %v277_v3  ;;  %s551_s16 = sshra.s32 %s336_s24, 4  ;;  %s557_s9 = scalar_lea.hbm %s788_s3, 64  ;;  %s552_s16 = int_to_ptr.hbm [resolvable:$true] %s551_s16 }
  0x20   : > { %s553_s27 = scalar_lea.hbm %s552_s16, 8  ;;  %p558_p4 = scmp.lt.s32.totalorder %s552_s16, %s788_s3 }
  0x21   : > { %299 = vmatpush.msra.mxu0 %v276_v4  ;;  %p554_p0 = scmp.ne.s32.totalorder %s552_s16, %s553_s27  ;;  %p559_p5 = scmp.lt.s32.totalorder %s557_s9, %s553_s27 }
  0x22   : > { %457 = vmatmul.msk.f32.vlgmr.msra.gmra.mxu0 %vm280_vm1, %v275_v5 }
  0x23   : > { %p555_p1 = pnand %p554_p0, %p705_p3  ;;  %p560_p6 = por %p559_p5, %p558_p4 }
  0x25   : > { %p556_p2 = pneg %p555_p1 }
  0x27   : > { %p561_p7 = pnand %p560_p6, %p556_p2 }
  0x9f   : > { %v301_v7 = vpop.f32.mrf.mxu0 }
  0xa0   : > { %v304_v8 = vadd.f32 %v301_v7, %v274_v6 }
  0xa2   : > { %306 = vst.msk [vmem:[#allocation2] sm:$0xff] %vm272_vm0, %v304_v8 }
  0xa9   : > { %v310_v10 = vld [vmem:[#allocation2] sm:$0xff] }
  0xaa   : > { %v315_v11 = vadd.f32 %v536_v9, %v310_v10 }
  0xac   : > { %316 = vst.msk [vmem:[%s244_s20] sm:$0xff] %vm272_vm0, %v315_v11 }
  0xad   : > { %564 = shalt.err (!%p561_p7)
}
  0xae   : > { %464 = dma.vmem_to_hbm [thread:$0]  (%p705_p3), %s334_s21, 128, %s336_s24, %s318_s15  }
  0xaf PF: > { %p470_p9 = scmp.ge.s32.totalorder %s631_s19, 2  ;;  %s347_s4 = sand.u32 1, %s603_s12  }
  0xb0   : > { %s348_s7 = scalar_lea.sflag [#allocation4], %s347_s4 }
  0xb1   : > { %p467_p10 = pnand %p470_p9, %p714_p8 }
  0xb3   : > { %p468_p11 = pneg %p467_p10 }
  0xb5   : > { %598 = dma.done.wait (%p468_p11), %s348_s7, 128  }
  0xb6   : > { %600 = vsyncadd (%p468_p11), %s348_s7, 4294967168  ;;  %s16_s19 = sadd.s32 1, %s631_s19   ;;  %s791_s12 = smov %s607_s13 }
  0xb7   : > { %p13_p12 = scmp.ge.s32.totalorder %s16_s19, 10   ;;  %s792_s13 = smov %s611_s14 }
  0xb8   : > { %s793_s14 = smov %s723_s30  ;;  %s794_s15 = smov %s623_s17 }
  0xb9   : > { %s795_s16 = smov %s627_s18  ;;  %s796_s17 = smov %s799_s22 }
  0xba   : > { %s797_s18 = smov %s803_s23  ;;  %15 = sbr.rel (!%p13_p12) target bundleno = 5 (0x5), region = 81 }
  0xbf   :  { %354 = vsyncpa [#allocation4], 1 }
  0xc0   :  { %356 = vsyncpa [#allocation4 + $0x1], 1 }

</bundles_post_ra>
